<compile_context>
chip_gen: v6e
topology: v6e:2x2x1
jax: 0.10.0
libtpu: 0.0.40
codegen_flags: <defaults>
</compile_context>

<pallas_src>
import math

import jax
import jax.numpy as jnp
from jax.experimental import pallas as pl
from jax.experimental.pallas import tpu as pltpu


# ---------------------------------------------------------------------------
# Kernel
# ---------------------------------------------------------------------------
def _linear_kernel(x_ref, w_ref, b_ref, o_ref, acc_ref):
    """One (tm, tn) output tile; K is reduced along grid axis 2.

    x_ref:   (tm, tk)  activation tile
    w_ref:   (tk, tn)  pre-transposed weight tile (N is the lane dim)
    b_ref:   (1,  tn)  bias tile (f32)
    o_ref:   (tm, tn)  output tile (written on the last K step only)
    acc_ref: (tm, tn)  f32 accumulator scratch (lives across K steps)
    """
    k = pl.program_id(2)

    # MXU matmul with f32 accumulation; weight is already (K, N) so the RHS
    # is lane-dense and needs no per-tile transpose.
    partial = jnp.dot(x_ref[...], w_ref[...], preferred_element_type=jnp.float32)

    @pl.when(k == 0)
    def _first():
        # Single assignment: fold the bias in and skip the acc read.
        acc_ref[...] = partial + b_ref[...].astype(jnp.float32)

    @pl.when(k > 0)
    def _accum():
        acc_ref[...] += partial

    @pl.when(k == pl.num_programs(2) - 1)
    def _finalize():
        o_ref[...] = acc_ref[...].astype(o_ref.dtype)


# ---------------------------------------------------------------------------
# Tiling / device helpers
# ---------------------------------------------------------------------------
def _cdiv(a: int, b: int) -> int:
    return -(-a // b)


def _round_up(a: int, b: int) -> int:
    return _cdiv(a, b) * b


def _fit_tile(dim: int, max_tile: int, align: int, min_blocks: int = 1):
    """Return (tile, padded_dim) with padded_dim % tile == 0.

    A dim that fits in one tile uses the full extent (always layout-legal,
    zero padding).  Otherwise the tile is right-sized to ceil(dim / nblocks)
    rounded to `align`, so padding stays below one alignment group per block.
    """
    if dim <= max_tile and min_blocks <= 1:
        return dim, dim
    nblocks = max(min_blocks, _cdiv(dim, max_tile))
    tile = _round_up(_cdiv(dim, nblocks), align)
    return tile, tile * nblocks


def _device_config():
    """Per-generation VMEM budget, core count and default tile sizes."""
    try:
        kind = jax.devices()[0].device_kind.lower()
    except Exception:  # pragma: no cover - defensive
        kind = ""
    if "v7" in kind or "7x" in kind:
        # v7x: 64 MiB VMEM per TensorCore, 2 TensorCores per chip.
        return {"vmem_limit": 48 * 2**20, "cores": 2,
                "tile_m": 512, "tile_n": 512, "tile_k": 1024}
    if "v6" in kind:
        # v6e: 128 MiB VMEM, 1 TensorCore.
        return {"vmem_limit": 96 * 2**20, "cores": 1,
                "tile_m": 512, "tile_n": 512, "tile_k": 1024}
    if "v5" in kind and ("lite" in kind or "5e" in kind):
        # v5e: 128 MiB VMEM; prefer a larger tk to amortize the acc RMW
        # (only one vector-store slot on v5e).
        return {"vmem_limit": 96 * 2**20, "cores": 1,
                "tile_m": 512, "tile_n": 512, "tile_k": 2048}
    # Unknown generation: conservative limit that still fits the default tiles
    # (~15 MiB footprint with triple-buffered operands).
    return {"vmem_limit": 32 * 2**20, "cores": 1,
            "tile_m": 512, "tile_n": 512, "tile_k": 1024}


# ---------------------------------------------------------------------------
# One-time parameter preparation (hoisted out of the per-call path)
# ---------------------------------------------------------------------------
def prepare_linear_params(weight, bias, *, compute_dtype=None, config=None):
    """Pre-transpose the (N, K) weight to (K, N), pad K/N to the tile grid and
    reshape the bias, ONCE.  The result is reused by every `linear_pallas` call.
    """
    cfg = dict(config) if config is not None else _device_config()
    N, K = weight.shape

    # On 2-TensorCore chips make sure the "parallel" N axis has >=2 blocks
    # (when N is large enough to split on 128-lane boundaries).
    min_n_blocks = 2 if (cfg["cores"] >= 2 and N >= 512) else 1
    tn, Np = _fit_tile(N, cfg["tile_n"], 128, min_blocks=min_n_blocks)
    tk, Kp = _fit_tile(K, cfg["tile_k"], 128)

    w_t = weight.T                                   # (K, N): lane-dense RHS
    if compute_dtype is not None:
        w_t = w_t.astype(compute_dtype)
    if (Kp, Np) != (K, N):
        w_t = jnp.pad(w_t, ((0, Kp - K), (0, Np - N)))

    b2d = bias.reshape(1, N).astype(jnp.float32)
    if Np != N:
        b2d = jnp.pad(b2d, ((0, 0), (0, Np - N)))

    return {"w_t": w_t, "b2d": b2d, "K": K, "N": N, "Kp": Kp, "Np": Np,
            "tk": tk, "tn": tn, "compute_dtype": compute_dtype, "cfg": cfg}


# ---------------------------------------------------------------------------
# Forward pass
# ---------------------------------------------------------------------------
def linear_pallas(x, params):
    """y = x @ weight.T + bias using the pre-prepared (K, N) weight."""
    w_t, b2d = params["w_t"], params["b2d"]
    K, N = params["K"], params["N"]
    Kp, Np = params["Kp"], params["Np"]
    tk, tn = params["tk"], params["tn"]
    cfg = params["cfg"]
    compute_dtype = params["compute_dtype"]

    orig_shape = x.shape
    out_dtype = x.dtype
    x2d = x.reshape(-1, K)
    M = x2d.shape[0]

    tm, Mp = _fit_tile(M, cfg["tile_m"], 8)
    if compute_dtype is not None:
        x2d = x2d.astype(compute_dtype)
    if (Mp, Kp) != (M, K):
        x2d = jnp.pad(x2d, ((0, Mp - M), (0, Kp - K)))

    grid = (Mp // tm, Np // tn, Kp // tk)            # reduction (K) axis last

    # Deeper pipelining on BOTH streamed operands when K is actually streamed.
    if grid[2] >= 3:
        x_spec = pl.BlockSpec((tm, tk), lambda i, j, k: (i, k),
                              pipeline_mode=pl.Buffered(3))
        w_spec = pl.BlockSpec((tk, tn), lambda i, j, k: (k, j),
                              pipeline_mode=pl.Buffered(3))
    else:
        x_spec = pl.BlockSpec((tm, tk), lambda i, j, k: (i, k))
        w_spec = pl.BlockSpec((tk, tn), lambda i, j, k: (k, j))

    x_item = jnp.dtype(x2d.dtype).itemsize
    w_item = jnp.dtype(w_t.dtype).itemsize
    o_item = jnp.dtype(out_dtype).itemsize
    cost = pl.CostEstimate(
        flops=2 * Mp * Np * Kp,
        bytes_accessed=(Mp * Kp * x_item * grid[1]     # x re-read per N block
                        + Kp * Np * w_item * grid[0]   # w re-read per M block
                        + Np * 4                       # bias (f32)
                        + Mp * Np * o_item),
        transcendentals=0,
    )

    out = pl.pallas_call(
        _linear_kernel,
        out_shape=jax.ShapeDtypeStruct((Mp, Np), out_dtype),
        grid_spec=pltpu.PrefetchScalarGridSpec(
            num_scalar_prefetch=0,
            grid=grid,
            in_specs=[
                x_spec,
                w_spec,
                pl.BlockSpec((1, tn), lambda i, j, k: (0, j)),
            ],
            out_specs=pl.BlockSpec((tm, tn), lambda i, j, k: (i, j)),
            scratch_shapes=[pltpu.VMEM((tm, tn), jnp.float32)],
        ),
        compiler_params=pltpu.CompilerParams(
            dimension_semantics=("parallel", "parallel", "arbitrary"),
            vmem_limit_bytes=cfg["vmem_limit"],
        ),
        cost_estimate=cost,
    )(x2d, w_t, b2d)

    if (Mp, Np) != (M, N):
        out = out[:M, :N]
    return out.reshape(*orig_shape[:-1], N)


# ---------------------------------------------------------------------------
# Self-test
# ---------------------------------------------------------------------------
if __name__ == "__main__":
    key = jax.random.PRNGKey(0)
    k1, k2, k3, k4, k5 = jax.random.split(key, 5)

    # --- Small-shape check, mirroring the PyTorch module init:
    #     weight = (1/sqrt(in_features)) * randn(out, in), bias = zeros(out)
    in_features, out_features = 32, 64
    gain = 1.0 / math.sqrt(in_features)
    weight = gain * jax.random.normal(
        k1, (out_features, in_features), dtype=jnp.float32
    )
    bias = jnp.zeros((out_features,), dtype=jnp.float32)
    params = prepare_linear_params(weight, bias)          # one-time weight prep

    x = jax.random.normal(k2, (2, 8, in_features), dtype=jnp.float32)
    y = jax.block_until_ready(linear_pallas(x, params))
    y_ref = x @ weight.T + bias
    assert y.shape == (2, 8, out_features)
    assert jnp.allclose(y, y_ref, atol=1e-5, rtol=1e-5), "small-shape mismatch"

    # --- Larger check exercising right-sized multi-block M/N/K tiling,
    #     zero-padding of K/N, the K-streamed Buffered(3) path, and a
    #     non-zero bias folded into the k==0 assignment.
    M2, K2, N2 = 1100, 2600, 900
    w2 = (1.0 / math.sqrt(K2)) * jax.random.normal(k3, (N2, K2), dtype=jnp.float32)
    b2 = 0.1 * jax.random.normal(k4, (N2,), dtype=jnp.float32)
    p2 = prepare_linear_params(w2, b2)
    x2 = jax.random.normal(k5, (M2, K2), dtype=jnp.float32)

    y2 = jax.block_until_ready(linear_pallas(x2, p2))
    y2_ref = jnp.dot(x2, w2.T, precision=jax.lax.Precision.HIGHEST) + b2
    assert y2.shape == (M2, N2)
    assert jnp.allclose(y2, y2_ref, atol=5e-3, rtol=5e-3), "tiled-path mismatch"

    # --- Optional bf16-operand / f32-accumulate path (looser tolerance).
    p2_bf16 = prepare_linear_params(w2, b2, compute_dtype=jnp.bfloat16)
    y2_bf16 = jax.block_until_ready(linear_pallas(x2, p2_bf16))
    assert y2_bf16.shape == (M2, N2)
    assert jnp.allclose(y2_bf16, y2_ref, atol=1e-1, rtol=1e-1), "bf16-path mismatch"

    print("KERNEL_OK")
</pallas_src>

<mosaic_0001>
module attributes {stable_mosaic.version = 11 : i64} {
  func.func @_linear_kernel(%arg0: i32, %arg1: i32, %arg2: i32, %arg3: memref<16x32xf32, #tpu.memory_space<vmem>>, %arg4: memref<32x64xf32, #tpu.memory_space<vmem>>, %arg5: memref<1x64xf32, #tpu.memory_space<vmem>>, %arg6: memref<16x64xf32, #tpu.memory_space<vmem>>, %arg7: memref<16x64xf32, #tpu.memory_space<vmem>>) attributes {dimension_semantics = [#tpu.dimension_semantics<parallel>, #tpu.dimension_semantics<parallel>, #tpu.dimension_semantics<arbitrary>], iteration_bounds = array<i64: 1, 1, 1>, scalar_prefetch = 0 : i64, scratch_operands = 1 : i64, tpu.core_type = #tpu.core_type<tc>, window_params = [{transform_indices = @transform_0, window_bounds = array<i64: 16, 32>}, {transform_indices = @transform_1, window_bounds = array<i64: 32, 64>}, {transform_indices = @transform_2, window_bounds = array<i64: 1, 64>}, {transform_indices = @transform_3, window_bounds = array<i64: 16, 64>}]} {
    %c0 = arith.constant 0 : index
    %c0_0 = arith.constant 0 : index
    %0 = vector.load %arg3[%c0, %c0_0] : memref<16x32xf32, #tpu.memory_space<vmem>>, vector<16x32xf32>
    %c0_1 = arith.constant 0 : index
    %c0_2 = arith.constant 0 : index
    %1 = vector.load %arg4[%c0_1, %c0_2] : memref<32x64xf32, #tpu.memory_space<vmem>>, vector<32x64xf32>
    %cst = arith.constant dense<0.000000e+00> : vector<16x64xf32>
    %2 = tpu.matmul %0, %1, %cst {dimension_numbers = #tpu.dot_dimension_numbers<[1], [0], [0], [1], [0, 0, 1, 1], [], []>} : vector<16x32xf32>, vector<32x64xf32>, vector<16x64xf32> -> vector<16x64xf32>
    %c0_i32 = arith.constant 0 : i32
    %3 = arith.cmpi eq, %arg2, %c0_i32 : i32
    %4 = arith.extui %3 : i1 to i32
    %c0_i32_3 = arith.constant 0 : i32
    %5 = arith.cmpi ne, %4, %c0_i32_3 : i32
    scf.if %5 {
      %c0_8 = arith.constant 0 : index
      %c0_9 = arith.constant 0 : index
      %12 = vector.load %arg5[%c0_8, %c0_9] : memref<1x64xf32, #tpu.memory_space<vmem>>, vector<1x64xf32>
      %13 = vector.broadcast %12 : vector<1x64xf32> to vector<16x64xf32>
      %14 = arith.addf %2, %13 : vector<16x64xf32>
      %c0_10 = arith.constant 0 : index
      %c0_11 = arith.constant 0 : index
      %15 = vector.load %arg7[%c0_10, %c0_11] : memref<16x64xf32, #tpu.memory_space<vmem>>, vector<16x64xf32>
      tpu.vector_store %arg7[%c0_10, %c0_11], %14 {strides = array<i32>} : memref<16x64xf32, #tpu.memory_space<vmem>>, vector<16x64xf32>,
    } else {
    }
    %c0_i32_4 = arith.constant 0 : i32
    %6 = arith.cmpi sgt, %arg2, %c0_i32_4 : i32
    %7 = arith.extui %6 : i1 to i32
    %c0_i32_5 = arith.constant 0 : i32
    %8 = arith.cmpi ne, %7, %c0_i32_5 : i32
    scf.if %8 {
      %c0_8 = arith.constant 0 : index
      %c0_9 = arith.constant 0 : index
      %12 = vector.load %arg7[%c0_8, %c0_9] : memref<16x64xf32, #tpu.memory_space<vmem>>, vector<16x64xf32>
      %13 = arith.addf %12, %2 : vector<16x64xf32>
      %c0_10 = arith.constant 0 : index
      %c0_11 = arith.constant 0 : index
      %14 = vector.load %arg7[%c0_10, %c0_11] : memref<16x64xf32, #tpu.memory_space<vmem>>, vector<16x64xf32>
      tpu.vector_store %arg7[%c0_10, %c0_11], %13 {strides = array<i32>} : memref<16x64xf32, #tpu.memory_space<vmem>>, vector<16x64xf32>,
    } else {
    }
    %c0_i32_6 = arith.constant 0 : i32
    %9 = arith.cmpi eq, %arg2, %c0_i32_6 : i32
    %10 = arith.extui %9 : i1 to i32
    %c0_i32_7 = arith.constant 0 : i32
    %11 = arith.cmpi ne, %10, %c0_i32_7 : i32
    scf.if %11 {
      %c0_8 = arith.constant 0 : index
      %c0_9 = arith.constant 0 : index
      %12 = vector.load %arg7[%c0_8, %c0_9] : memref<16x64xf32, #tpu.memory_space<vmem>>, vector<16x64xf32>
      %c0_10 = arith.constant 0 : index
      %c0_11 = arith.constant 0 : index
      %13 = vector.load %arg6[%c0_10, %c0_11] : memref<16x64xf32, #tpu.memory_space<vmem>>, vector<16x64xf32>
      tpu.vector_store %arg6[%c0_10, %c0_11], %12 {strides = array<i32>} : memref<16x64xf32, #tpu.memory_space<vmem>>, vector<16x64xf32>,
    } else {
    }
    return
  }
  func.func @transform_0(%arg0: i32, %arg1: i32, %arg2: i32) -> (i32, i32) {
    %c0_i32 = arith.constant 0 : i32
    return %arg0, %arg2 : i32, i32
  }
  func.func @transform_1(%arg0: i32, %arg1: i32, %arg2: i32) -> (i32, i32) {
    %c0_i32 = arith.constant 0 : i32
    return %arg2, %arg1 : i32, i32
  }
  func.func @transform_2(%arg0: i32, %arg1: i32, %arg2: i32) -> (i32, i32) {
    %c0_i32 = arith.constant 0 : i32
    %c0_i32_0 = arith.constant 0 : i32
    return %c0_i32, %arg1 : i32, i32
  }
  func.func @transform_3(%arg0: i32, %arg1: i32, %arg2: i32) -> (i32, i32) {
    %c0_i32 = arith.constant 0 : i32
    return %arg0, %arg1 : i32, i32
  }
}

</mosaic_0001>

<bundles_post_ra>
// kernel: tpu_custom_call.1
= control target key start
LH: loop header
LB: loop body
LE: loop exit
PB: predicated region body
PF: predicated region fallthrough
CT: control target
= control target key end

     0   :  { %8 = vsyncpa [#allocation4], 0  ;;  %s323_s0 = inlined_call_operand.hbm [shape: f32[16,32], index: 0, kind: input, shape index: {}]   ;;  %s324_s1 = inlined_call_operand.hbm [shape: f32[32,64], index: 1, kind: input, shape index: {}]   ;;  %s325_s2 = inlined_call_operand.vmem [shape: f32[1,64], index: 2, kind: input, shape index: {}]   ;;  %s326_s3 = inlined_call_operand.hbm [shape: f32[16,64], index: 3, kind: output, shape index: {}]  }
   0x1   :  { %9 = vsyncpa [#allocation7], 0 }
   0x2   :  { %10 = vsyncpa [#allocation5], 0  ;;  %s275_s12 = smov [#allocation3]  }
   0x3   :  { %s16_s13 = sshll.u32 %s275_s12, 4  ;;  %s17_s13 = int_to_ptr.vmem [resolvable:$true] %s16_s13 }
   0x4   :  { %s217_s14 = scalar_lea.vmem %s17_s13, 256  ;;  %p222_p1 = scmp.lt.s32.totalorder %s17_s13, %s17_s13 }
   0x5   :  { %p218_p0 = scmp.ne.s32.totalorder %s17_s13, %s217_s14  ;;  %p223_p2 = scmp.lt.s32.totalorder %s217_s14, %s217_s14 }
   0x7   :  { %p224_p3 = por %p223_p2, %p222_p1 }
   0x9   :  { %p225_p4 = pnand %p224_p3, %p218_p0 }
   0xb   :  { %228 = shalt.err (!%p225_p4)
}
   0xc   :  { %s276_s15 = smov 128   ;;  %s277_s16 = smov 8  }
   0xd   :  { %22 = dma.hbm_to_vmem [thread:$0]  %s323_s0, 256, %s17_s13, [#allocation4], %s276_s15, %s276_s15, %s277_s16  }
   0xe   :  { %s278_s19 = smov [#allocation6]  }
   0xf   :  { %s28_s20 = sshll.u32 %s278_s19, 4  ;;  %s29_s20 = int_to_ptr.vmem [resolvable:$true] %s28_s20 }
  0x10   :  { %s237_s21 = scalar_lea.vmem %s29_s20, 512  ;;  %p242_p6 = scmp.lt.s32.totalorder %s29_s20, %s29_s20 }
  0x11   :  { %p238_p5 = scmp.ne.s32.totalorder %s29_s20, %s237_s21  ;;  %p243_p7 = scmp.lt.s32.totalorder %s237_s21, %s237_s21 }
  0x13   :  { %p244_p8 = por %p243_p7, %p242_p6 }
  0x15   :  { %p245_p9 = pnand %p244_p8, %p238_p5 }
  0x17   :  { %248 = shalt.err (!%p245_p9)
}
  0x18   :  { %34 = dma.hbm_to_vmem [thread:$0]  %s324_s1, 512, %s29_s20, [#allocation7], %s276_s15, %s276_s15, %s277_s16  }
  0x19   :  { %269 = dma.done.wait [#allocation4], 256  }
  0x1a   :  { %270 = vsyncadd [#allocation4], 4294967040 }
  0x1b   :  { %271 = dma.done.wait [#allocation7], 512  }
  0x1c   :  { %272 = vsyncadd [#allocation7], 4294966784  ;;  %vm49_vm0 = vcmask 261120   ;;  %v48_v0 = vld [vmem:[#allocation6 + $0x18] sm:$0xff]  ;;  %v47_v1 = vld [vmem:[#allocation6 + $0x10] sm:$0xff]  ;;  %vm144_vm1 = vcmask 523264  }
  0x1d   :  { %193 = vmatprep.subr.mxu0 %v48_v0  ;;  %v43_v2 = vld [vmem:[#allocation3] sm:$0xff]  ;;  %v46_v3 = vld [vmem:[#allocation6 + $0x8] sm:$0xff]  ;;  %v45_v4 = vld [vmem:[#allocation6] sm:$0xff]  ;;  %s279_s24 = smov [#allocation8]  }
  0x1e   :  { %194 = vmatpush3.msra.mxu0 %v48_v0  ;;  %201 = vmatprep.mubr.msk.f32.mxu0 %vm49_vm0, %v43_v2  ;;  %v44_v5 = vld [vmem:[#allocation3 + $0x8] sm:$0xff]  ;;  %v186_v6 = vld [vmem:[%s325_s2] ss:$0 sm:$0xff]  ;;  %s171_s25 = sshll.u32 %s279_s24, 4  ;;  %s172_s25 = int_to_ptr.vmem [resolvable:$true] %s171_s25 }
  0x1f   :  { %195 = vmatprep.subr.mxu0 %v47_v1  ;;  %s249_s26 = scalar_lea.vmem %s172_s25, 256  ;;  %p254_p11 = scmp.lt.s32.totalorder %s172_s25, %s172_s25 }
  0x20   :  { %196 = vmatpush3.msra.mxu0 %v47_v1  ;;  %p250_p10 = scmp.ne.s32.totalorder %s172_s25, %s249_s26  ;;  %p255_p12 = scmp.lt.s32.totalorder %s249_s26, %s249_s26 }
  0x21   :  { %197 = vmatprep.subr.mxu0 %v46_v3 }
  0x22   :  { %198 = vmatpush3.msra.mxu0 %v46_v3  ;;  %p256_p13 = por %p255_p12, %p254_p11 }
  0x23   :  { %199 = vmatprep.subr.mxu0 %v45_v4 }
  0x24   :  { %200 = vmatpush3.msra.mxu0 %v45_v4  ;;  %p257_p0 = pnand %p256_p13, %p250_p10 }
  0x25   :  { %202 = vmatmul.mubr.msk.f32.vlgmr.msra.gmra.mxu0 %vm49_vm0, %v44_v5 }
  0xe5   :  { %v203_v7 = vpop.f32.mrf.mxu0 }
  0xe6   :  { %v143_v8 = vadd.f32 %v203_v7, %v186_v6 }
  0xe7   :  { %v122_v9 = vpop.f32.mrf.mxu0 }
  0xe8   :  { %146 = vst.msk [vmem:[#allocation2 + $0x8] sm:$0xff] %vm144_vm1, %v143_v8  ;;  %v142_v10 = vadd.f32 %v186_v6, %v122_v9 }
  0xea   :  { %145 = vst.msk [vmem:[#allocation2] sm:$0xff] %vm144_vm1, %v142_v10 }
  0xef   :  { %v162_v11 = vld [vmem:[#allocation2 + $0x8] sm:$0xff] }
  0xf0   :  { %165 = vst.msk [vmem:[#allocation8 + $0x8] sm:$0xff] %vm144_vm1, %v162_v11 }
  0xf1   :  { %v161_v12 = vld [vmem:[#allocation2] sm:$0xff] }
  0xf2   :  { %164 = vst.msk [vmem:[#allocation8] sm:$0xff] %vm144_vm1, %v161_v12 }
  0xf3   :  { %260 = shalt.err (!%p257_p0)
}
  0xf4   :  { %177 = dma.vmem_to_hbm [thread:$0]  %s172_s25, 256, %s326_s3, [#allocation5], %s276_s15, %s276_s15, %s277_s16  }
  0xf5   :  { %273 = dma.done.wait [#allocation5], 256  }
  0xf6   :  { %274 = vsyncadd [#allocation5], 4294967040 }
  0xf7   :  { %181 = vsyncpa [#allocation4], 1 }
  0xf8   :  { %182 = vsyncpa [#allocation7], 1 }
  0xf9   :  { %183 = vsyncpa [#allocation5], 1 }

</bundles_post_ra>
